<compile_context>
chip_gen: v7x
topology: tpu7x:2x2x1
jax: 0.10.0
libtpu: 0.0.40
codegen_flags: <defaults>
</compile_context>

<pallas_src>
import functools
import math

import jax
import jax.numpy as jnp
from jax.experimental import pallas as pl
from jax.experimental.pallas import tpu as pltpu


def _round_up(x, m):
    return (x + m - 1) // m * m


def _double_conv_kernel(x_ref, wmask_ref, w1_ref, sb1_ref, w2_ref, sb2_ref,
                        o_ref, xpad_ref, hpad_ref, p1_ref, p2_ref,
                        *, W, HW, HWP, LPAD, SEG, Bt, PW):
    """One group of `Bt` images per grid step, packed along the lane axis.

    x_ref    : (Bt, Cin, HWP)          input images (lane = flattened H*W)
    wmask_ref: (2, 1, PW)              column-validity masks for kw=0 / kw=2
    w1_ref   : (C1, 9*Cin)             conv1 weights as an im2col matrix
    sb1_ref  : (2, C1, 1)              folded BN1 scale / bias (f32)
    w2_ref   : (C2, 9*C1)              conv2 weights as an im2col matrix
    sb2_ref  : (2, C2, 1)              folded BN2 scale / bias (f32)
    o_ref    : (Bt, C2, HWP)           output block
    xpad_ref : VMEM (Cin, LPAD+Bt*SEG) zero-haloed input staging buffer
    hpad_ref : VMEM (C1,  LPAD+Bt*SEG) zero-haloed hidden staging buffer
    p1_ref   : VMEM (9*Cin, PW)        im2col patch for conv1
    p2_ref   : VMEM (9*C1,  PW)        im2col patch for conv2
    """
    m0 = wmask_ref[0]                           # (1, PW)
    m2 = wmask_ref[1]                           # (1, PW)

    def zero_halo_bands(ref):
        c = ref.shape[0]
        # Left halo band only.
        ref[:, :LPAD] = jnp.zeros((c, LPAD), ref.dtype)
        # Inter-image / trailing gap bands (the payload is fully overwritten
        # below, so it is never re-zeroed).
        for bt in range(Bt):
            g0 = LPAD + bt * SEG + HW
            g1 = LPAD + (bt + 1) * SEG
            ref[:, g0:g1] = jnp.zeros((c, g1 - g0), ref.dtype)

    def build_patch(pad_ref, patch_ref):
        cin = pad_ref.shape[0]
        for kh in range(3):
            for kw in range(3):
                off = (kh - 1) * W + (kw - 1)
                sl = pad_ref[:, LPAD + off:LPAD + off + PW]   # (cin, PW)
                if kw == 0:
                    sl = sl * m0
                elif kw == 2:
                    sl = sl * m2
                t = kh * 3 + kw
                patch_ref[t * cin:(t + 1) * cin, :] = sl

    def conv_bn_relu(pad_ref, patch_ref, w_ref, sb_ref):
        build_patch(pad_ref, patch_ref)
        acc = jnp.dot(w_ref[...], patch_ref[...],
                      preferred_element_type=jnp.float32)      # (Cout, PW)
        return jnp.maximum(acc * sb_ref[0] + sb_ref[1], 0.0)   # f32

    # Zero only the halo/gap bands.
    # TODO(synk): could be done once per core, but there is no safe
    # "first iteration on this core" predicate for a parallel grid
    # (program_id==0 never runs on the second v7x core), so do it per step.
    zero_halo_bands(xpad_ref)
    zero_halo_bands(hpad_ref)

    # Stage the input payloads (halo + gap bands are already zero).
    for bt in range(Bt):
        base = LPAD + bt * SEG
        xpad_ref[:, base:base + HW] = x_ref[bt, :, :HW].astype(xpad_ref.dtype)

    # conv1 => folded BN1 => ReLU   (single im2col matmul)
    h1 = conv_bn_relu(xpad_ref, p1_ref, w1_ref, sb1_ref)        # (C1, PW) f32

    # Re-stage the hidden activation payloads; gap/pad lanes of h1 hold
    # garbage and are deliberately not copied (hpad gaps stay zero).
    for bt in range(Bt):
        base = bt * SEG
        hpad_ref[:, LPAD + base:LPAD + base + HW] = (
            h1[:, base:base + HW].astype(hpad_ref.dtype))

    # conv2 => folded BN2 => ReLU
    out = conv_bn_relu(hpad_ref, p2_ref, w2_ref, sb2_ref)       # (C2, PW) f32

    for bt in range(Bt):
        base = bt * SEG
        o_ref[bt] = out[:, base:base + HWP].astype(o_ref.dtype)


def double_conv(x,
                conv1_w, conv1_b, bn1_gamma, bn1_beta, bn1_mean, bn1_var,
                conv2_w, conv2_b, bn2_gamma, bn2_beta, bn2_mean, bn2_var,
                eps=1e-5):
    """x: (B, Cin, H, W) NCHW.  conv*_w: (Cout, Cin, 3, 3), conv*_b: (Cout,)
    (PyTorch layouts).  BN params are per-channel inference/running stats."""
    B, Cin, H, W = x.shape
    C1 = conv1_w.shape[0]
    C2 = conv2_w.shape[0]
    HW = H * W

    # Lane-dense padded image width, inter-image gap and left halo (>= W+1,
    # rounded to the 128-lane tile so all payload stores are lane-aligned).
    HWP = _round_up(HW, 128)
    GAP = _round_up(W + 1, 128)
    LPAD = GAP
    SEG = HWP + GAP

    # Grid: two steps when the batch is even (one per TensorCore on v7x),
    # otherwise a single step; remaining batch is packed along the lane axis.
    G = 2 if (B % 2 == 0 and B >= 2) else 1
    Bt = B // G
    PW = (Bt - 1) * SEG + HWP            # im2col / matmul lane width

    # bf16 MXU path for bf16 inputs; f32 inputs keep f32 matmuls so results
    # stay within tight tolerance of the f32 reference.
    cdt = jnp.bfloat16 if x.dtype == jnp.bfloat16 else jnp.float32
    f32 = jnp.float32

    # Fold conv bias + inference BatchNorm into per-channel scale/bias (f32).
    s1 = (bn1_gamma / jnp.sqrt(bn1_var + eps)).astype(f32)
    sb1 = jnp.stack(
        [s1, bn1_beta.astype(f32) + s1 * (conv1_b - bn1_mean).astype(f32)]
    ).reshape(2, C1, 1)
    s2 = (bn2_gamma / jnp.sqrt(bn2_var + eps)).astype(f32)
    sb2 = jnp.stack(
        [s2, bn2_beta.astype(f32) + s2 * (conv2_b - bn2_mean).astype(f32)]
    ).reshape(2, C2, 1)

    # (Cout, Cin, 3, 3) -> (Cout, 9*Cin) matching patch row order (tap, ci).
    w1_mat = jnp.transpose(conv1_w, (0, 2, 3, 1)).reshape(C1, 9 * Cin).astype(cdt)
    w2_mat = jnp.transpose(conv2_w, (0, 2, 3, 1)).reshape(C2, 9 * C1).astype(cdt)

    # Column-validity masks over the packed lane axis: kw=0 needs w-1 >= 0,
    # kw=2 needs w+1 < W.  Gap / pad lanes are don't-care.
    lane = jnp.arange(PW, dtype=jnp.int32)
    q = lane % SEG
    col = q % W
    payload = q < HW
    m0 = (payload & (col >= 1)).astype(cdt)
    m2 = (payload & (col <= W - 2)).astype(cdt)
    wmask = jnp.stack([m0, m2]).reshape(2, 1, PW)

    x_flat = x.reshape(B, Cin, HW)
    if HWP != HW:
        x_flat = jnp.pad(x_flat, ((0, 0), (0, 0), (0, HWP - HW)))

    kernel = functools.partial(_double_conv_kernel, W=W, HW=HW, HWP=HWP,
                               LPAD=LPAD, SEG=SEG, Bt=Bt, PW=PW)

    pad_w = LPAD + Bt * SEG
    scratch_shapes = [
        pltpu.VMEM((Cin, pad_w), cdt),        # zero-haloed input staging
        pltpu.VMEM((C1, pad_w), cdt),         # zero-haloed hidden staging
        pltpu.VMEM((9 * Cin, PW), cdt),       # im2col patch, conv1
        pltpu.VMEM((9 * C1, PW), cdt),        # im2col patch, conv2
    ]

    def _nbytes(shape, dt):
        return math.prod(shape) * jnp.dtype(dt).itemsize

    scratch_bytes = (_nbytes((Cin, pad_w), cdt) + _nbytes((C1, pad_w), cdt)
                     + _nbytes((9 * Cin, PW), cdt) + _nbytes((9 * C1, PW), cdt))
    block_bytes = (_nbytes((Bt, Cin, HWP), x.dtype)
                   + _nbytes((Bt, C2, HWP), x.dtype)
                   + _nbytes((2, 1, PW), cdt)
                   + _nbytes((C1, 9 * Cin), cdt) + _nbytes((C2, 9 * C1), cdt)
                   + _nbytes((2, C1, 1), f32) + _nbytes((2, C2, 1), f32))
    # Scratch + double-buffered blocks, 2x headroom, clamped to v7x's budget.
    vmem_limit = int(min(64 * 1024 * 1024,
                         max(16 * 1024 * 1024,
                             2 * (scratch_bytes + 2 * block_bytes))))

    out_flat = pl.pallas_call(
        kernel,
        out_shape=jax.ShapeDtypeStruct((B, C2, HWP), x.dtype),
        grid_spec=pltpu.PrefetchScalarGridSpec(
            num_scalar_prefetch=0,
            grid=(G,),
            in_specs=[
                pl.BlockSpec((Bt, Cin, HWP), lambda g: (g, 0, 0)),   # x
                pl.BlockSpec((2, 1, PW), lambda g: (0, 0, 0)),       # masks
                pl.BlockSpec((C1, 9 * Cin), lambda g: (0, 0)),       # w1
                pl.BlockSpec((2, C1, 1), lambda g: (0, 0, 0)),       # bn1 s/b
                pl.BlockSpec((C2, 9 * C1), lambda g: (0, 0)),        # w2
                pl.BlockSpec((2, C2, 1), lambda g: (0, 0, 0)),       # bn2 s/b
            ],
            out_specs=pl.BlockSpec((Bt, C2, HWP), lambda g: (g, 0, 0)),
            scratch_shapes=scratch_shapes,
        ),
        compiler_params=pltpu.CompilerParams(
            dimension_semantics=("parallel",),
            vmem_limit_bytes=vmem_limit,
        ),
    )(x_flat, wmask, w1_mat, sb1, w2_mat, sb2)

    return out_flat[:, :, :HW].reshape(B, C2, H, W)


def double_conv_ref(x,
                    conv1_w, conv1_b, bn1_gamma, bn1_beta, bn1_mean, bn1_var,
                    conv2_w, conv2_b, bn2_gamma, bn2_beta, bn2_mean, bn2_var,
                    eps=1e-5):
    """Pure-JAX reference (conv + bias, eval-mode BN, ReLU) x 2."""
    def block(y, w, b, gamma, beta, mean, var):
        y = jax.lax.conv_general_dilated(
            y, w, window_strides=(1, 1), padding=((1, 1), (1, 1)),
            dimension_numbers=("NCHW", "OIHW", "NCHW"))
        y = y + b[None, :, None, None]
        y = (y - mean[None, :, None, None]) * (
            gamma[None, :, None, None] / jnp.sqrt(var[None, :, None, None] + eps))
        y = y + beta[None, :, None, None]
        return jnp.maximum(y, 0.0)

    y = block(x, conv1_w, conv1_b, bn1_gamma, bn1_beta, bn1_mean, bn1_var)
    y = block(y, conv2_w, conv2_b, bn2_gamma, bn2_beta, bn2_mean, bn2_var)
    return y


if __name__ == "__main__":
    B, Cin, Cout, H, W = 2, 4, 8, 16, 16

    key = jax.random.PRNGKey(0)
    ks = jax.random.split(key, 13)

    x = jax.random.normal(ks[0], (B, Cin, H, W), dtype=jnp.float32)

    conv1_w = 0.2 * jax.random.normal(ks[1], (Cout, Cin, 3, 3), dtype=jnp.float32)
    conv1_b = 0.1 * jax.random.normal(ks[2], (Cout,), dtype=jnp.float32)
    bn1_gamma = 1.0 + 0.1 * jax.random.normal(ks[3], (Cout,), dtype=jnp.float32)
    bn1_beta = 0.1 * jax.random.normal(ks[4], (Cout,), dtype=jnp.float32)
    bn1_mean = 0.1 * jax.random.normal(ks[5], (Cout,), dtype=jnp.float32)
    bn1_var = jax.random.uniform(ks[6], (Cout,), dtype=jnp.float32,
                                 minval=0.5, maxval=1.5)

    conv2_w = 0.2 * jax.random.normal(ks[7], (Cout, Cout, 3, 3), dtype=jnp.float32)
    conv2_b = 0.1 * jax.random.normal(ks[8], (Cout,), dtype=jnp.float32)
    bn2_gamma = 1.0 + 0.1 * jax.random.normal(ks[9], (Cout,), dtype=jnp.float32)
    bn2_beta = 0.1 * jax.random.normal(ks[10], (Cout,), dtype=jnp.float32)
    bn2_mean = 0.1 * jax.random.normal(ks[11], (Cout,), dtype=jnp.float32)
    bn2_var = jax.random.uniform(ks[12], (Cout,), dtype=jnp.float32,
                                 minval=0.5, maxval=1.5)

    args = (x,
            conv1_w, conv1_b, bn1_gamma, bn1_beta, bn1_mean, bn1_var,
            conv2_w, conv2_b, bn2_gamma, bn2_beta, bn2_mean, bn2_var)

    out = jax.block_until_ready(double_conv(*args))
    ref = jax.block_until_ready(double_conv_ref(*args))

    assert out.shape == (B, Cout, H, W), out.shape
    max_err = float(jnp.max(jnp.abs(out - ref)))
    assert jnp.allclose(out, ref, atol=1e-4, rtol=1e-4), f"max abs err {max_err}"

    print("KERNEL_OK")
</pallas_src>

<mosaic_0001>
module attributes {stable_mosaic.version = 11 : i64} {
  func.func @_double_conv_kernel(%arg0: i32, %arg1: memref<1x4x256xf32, #tpu.memory_space<vmem>>, %arg2: memref<2x1x256xf32, #tpu.memory_space<vmem>>, %arg3: memref<8x36xf32, #tpu.memory_space<vmem>>, %arg4: memref<2x8x1xf32, #tpu.memory_space<vmem>>, %arg5: memref<8x72xf32, #tpu.memory_space<vmem>>, %arg6: memref<2x8x1xf32, #tpu.memory_space<vmem>>, %arg7: memref<1x8x256xf32, #tpu.memory_space<vmem>>, %arg8: memref<4x512xf32, #tpu.memory_space<vmem>>, %arg9: memref<8x512xf32, #tpu.memory_space<vmem>>, %arg10: memref<36x256xf32, #tpu.memory_space<vmem>>, %arg11: memref<72x256xf32, #tpu.memory_space<vmem>>) attributes {dimension_semantics = [#tpu.dimension_semantics<parallel>], iteration_bounds = array<i64: 2>, scalar_prefetch = 0 : i64, scratch_operands = 4 : i64, tpu.core_type = #tpu.core_type<tc>, window_params = [{transform_indices = @transform_0, window_bounds = array<i64: 1, 4, 256>}, {pipeline_mode = #tpu.pipeline_mode<synchronous>, transform_indices = @transform_1, window_bounds = array<i64: 2, 1, 256>}, {pipeline_mode = #tpu.pipeline_mode<synchronous>, transform_indices = @transform_2, window_bounds = array<i64: 8, 36>}, {pipeline_mode = #tpu.pipeline_mode<synchronous>, transform_indices = @transform_3, window_bounds = array<i64: 2, 8, 1>}, {pipeline_mode = #tpu.pipeline_mode<synchronous>, transform_indices = @transform_4, window_bounds = array<i64: 8, 72>}, {pipeline_mode = #tpu.pipeline_mode<synchronous>, transform_indices = @transform_5, window_bounds = array<i64: 2, 8, 1>}, {transform_indices = @transform_6, window_bounds = array<i64: 1, 8, 256>}]} {
    %c0 = arith.constant 0 : index
    %c0_0 = arith.constant 0 : index
    %c0_1 = arith.constant 0 : index
    %0 = vector.load %arg2[%c0, %c0_0, %c0_1] : memref<2x1x256xf32, #tpu.memory_space<vmem>>, vector<1x1x256xf32>
    %1 = vector.shape_cast %0 : vector<1x1x256xf32> to vector<1x256xf32>
    %c1 = arith.constant 1 : index
    %c0_2 = arith.constant 0 : index
    %c0_3 = arith.constant 0 : index
    %2 = vector.load %arg2[%c1, %c0_2, %c0_3] : memref<2x1x256xf32, #tpu.memory_space<vmem>>, vector<1x1x256xf32>
    %3 = vector.shape_cast %2 : vector<1x1x256xf32> to vector<1x256xf32>
    %cst = arith.constant 0.000000e+00 : f32
    %4 = vector.broadcast %cst : f32 to vector<4x128xf32>
    %c0_4 = arith.constant 0 : index
    %c0_5 = arith.constant 0 : index
    %5 = vector.load %arg8[%c0_4, %c0_5] : memref<4x512xf32, #tpu.memory_space<vmem>>, vector<4x128xf32>
    tpu.vector_store %arg8[%c0_4, %c0_5], %4 {strides = array<i32>} : memref<4x512xf32, #tpu.memory_space<vmem>>, vector<4x128xf32>,
    %cst_6 = arith.constant 0.000000e+00 : f32
    %6 = vector.broadcast %cst_6 : f32 to vector<4x128xf32>
    %c0_7 = arith.constant 0 : index
    %c384 = arith.constant 384 : index
    %7 = vector.load %arg8[%c0_7, %c384] : memref<4x512xf32, #tpu.memory_space<vmem>>, vector<4x128xf32>
    tpu.vector_store %arg8[%c0_7, %c384], %6 {strides = array<i32>} : memref<4x512xf32, #tpu.memory_space<vmem>>, vector<4x128xf32>,
    %cst_8 = arith.constant 0.000000e+00 : f32
    %8 = vector.broadcast %cst_8 : f32 to vector<8x128xf32>
    %c0_9 = arith.constant 0 : index
    %c0_10 = arith.constant 0 : index
    %9 = vector.load %arg9[%c0_9, %c0_10] : memref<8x512xf32, #tpu.memory_space<vmem>>, vector<8x128xf32>
    tpu.vector_store %arg9[%c0_9, %c0_10], %8 {strides = array<i32>} : memref<8x512xf32, #tpu.memory_space<vmem>>, vector<8x128xf32>,
    %cst_11 = arith.constant 0.000000e+00 : f32
    %10 = vector.broadcast %cst_11 : f32 to vector<8x128xf32>
    %c0_12 = arith.constant 0 : index
    %c384_13 = arith.constant 384 : index
    %11 = vector.load %arg9[%c0_12, %c384_13] : memref<8x512xf32, #tpu.memory_space<vmem>>, vector<8x128xf32>
    tpu.vector_store %arg9[%c0_12, %c384_13], %10 {strides = array<i32>} : memref<8x512xf32, #tpu.memory_space<vmem>>, vector<8x128xf32>,
    %c0_14 = arith.constant 0 : index
    %c0_15 = arith.constant 0 : index
    %c0_16 = arith.constant 0 : index
    %12 = vector.load %arg1[%c0_14, %c0_15, %c0_16] : memref<1x4x256xf32, #tpu.memory_space<vmem>>, vector<1x4x256xf32>
    %13 = vector.shape_cast %12 : vector<1x4x256xf32> to vector<4x256xf32>
    %c0_17 = arith.constant 0 : index
    %c128 = arith.constant 128 : index
    %14 = vector.load %arg8[%c0_17, %c128] : memref<4x512xf32, #tpu.memory_space<vmem>>, vector<4x256xf32>
    tpu.vector_store %arg8[%c0_17, %c128], %13 {strides = array<i32>} : memref<4x512xf32, #tpu.memory_space<vmem>>, vector<4x256xf32>,
    %c0_18 = arith.constant 0 : index
    %c111 = arith.constant 111 : index
    %15 = vector.load %arg8[%c0_18, %c111] : memref<4x512xf32, #tpu.memory_space<vmem>>, vector<4x256xf32>
    %16 = vector.broadcast %1 : vector<1x256xf32> to vector<4x256xf32>
    %17 = arith.mulf %15, %16 : vector<4x256xf32>
    %c0_19 = arith.constant 0 : index
    %c0_20 = arith.constant 0 : index
    %18 = vector.load %arg10[%c0_19, %c0_20] : memref<36x256xf32, #tpu.memory_space<vmem>>, vector<4x256xf32>
    tpu.vector_store %arg10[%c0_19, %c0_20], %17 {strides = array<i32>} : memref<36x256xf32, #tpu.memory_space<vmem>>, vector<4x256xf32>,
    %c0_21 = arith.constant 0 : index
    %c112 = arith.constant 112 : index
    %19 = vector.load %arg8[%c0_21, %c112] : memref<4x512xf32, #tpu.memory_space<vmem>>, vector<4x256xf32>
    %c4 = arith.constant 4 : index
    %c0_22 = arith.constant 0 : index
    %20 = vector.load %arg10[%c4, %c0_22] : memref<36x256xf32, #tpu.memory_space<vmem>>, vector<4x256xf32>
    tpu.vector_store %arg10[%c4, %c0_22], %19 {strides = array<i32>} : memref<36x256xf32, #tpu.memory_space<vmem>>, vector<4x256xf32>,
    %c0_23 = arith.constant 0 : index
    %c113 = arith.constant 113 : index
    %21 = vector.load %arg8[%c0_23, %c113] : memref<4x512xf32, #tpu.memory_space<vmem>>, vector<4x256xf32>
    %22 = vector.broadcast %3 : vector<1x256xf32> to vector<4x256xf32>
    %23 = arith.mulf %21, %22 : vector<4x256xf32>
    %c8 = arith.constant 8 : index
    %c0_24 = arith.constant 0 : index
    %24 = vector.load %arg10[%c8, %c0_24] : memref<36x256xf32, #tpu.memory_space<vmem>>, vector<4x256xf32>
    tpu.vector_store %arg10[%c8, %c0_24], %23 {strides = array<i32>} : memref<36x256xf32, #tpu.memory_space<vmem>>, vector<4x256xf32>,
    %c0_25 = arith.constant 0 : index
    %c127 = arith.constant 127 : index
    %25 = vector.load %arg8[%c0_25, %c127] : memref<4x512xf32, #tpu.memory_space<vmem>>, vector<4x256xf32>
    %26 = vector.broadcast %1 : vector<1x256xf32> to vector<4x256xf32>
    %27 = arith.mulf %25, %26 : vector<4x256xf32>
    %c12 = arith.constant 12 : index
    %c0_26 = arith.constant 0 : index
    %28 = vector.load %arg10[%c12, %c0_26] : memref<36x256xf32, #tpu.memory_space<vmem>>, vector<4x256xf32>
    tpu.vector_store %arg10[%c12, %c0_26], %27 {strides = array<i32>} : memref<36x256xf32, #tpu.memory_space<vmem>>, vector<4x256xf32>,
    %c0_27 = arith.constant 0 : index
    %c128_28 = arith.constant 128 : index
    %29 = vector.load %arg8[%c0_27, %c128_28] : memref<4x512xf32, #tpu.memory_space<vmem>>, vector<4x256xf32>
    %c16 = arith.constant 16 : index
    %c0_29 = arith.constant 0 : index
    %30 = vector.load %arg10[%c16, %c0_29] : memref<36x256xf32, #tpu.memory_space<vmem>>, vector<4x256xf32>
    tpu.vector_store %arg10[%c16, %c0_29], %29 {strides = array<i32>} : memref<36x256xf32, #tpu.memory_space<vmem>>, vector<4x256xf32>,
    %c0_30 = arith.constant 0 : index
    %c129 = arith.constant 129 : index
    %31 = vector.load %arg8[%c0_30, %c129] : memref<4x512xf32, #tpu.memory_space<vmem>>, vector<4x256xf32>
    %32 = vector.broadcast %3 : vector<1x256xf32> to vector<4x256xf32>
    %33 = arith.mulf %31, %32 : vector<4x256xf32>
    %c20 = arith.constant 20 : index
    %c0_31 = arith.constant 0 : index
    %34 = vector.load %arg10[%c20, %c0_31] : memref<36x256xf32, #tpu.memory_space<vmem>>, vector<4x256xf32>
    tpu.vector_store %arg10[%c20, %c0_31], %33 {strides = array<i32>} : memref<36x256xf32, #tpu.memory_space<vmem>>, vector<4x256xf32>,
    %c0_32 = arith.constant 0 : index
    %c143 = arith.constant 143 : index
    %35 = vector.load %arg8[%c0_32, %c143] : memref<4x512xf32, #tpu.memory_space<vmem>>, vector<4x256xf32>
    %36 = vector.broadcast %1 : vector<1x256xf32> to vector<4x256xf32>
    %37 = arith.mulf %35, %36 : vector<4x256xf32>
    %c24 = arith.constant 24 : index
    %c0_33 = arith.constant 0 : index
    %38 = vector.load %arg10[%c24, %c0_33] : memref<36x256xf32, #tpu.memory_space<vmem>>, vector<4x256xf32>
    tpu.vector_store %arg10[%c24, %c0_33], %37 {strides = array<i32>} : memref<36x256xf32, #tpu.memory_space<vmem>>, vector<4x256xf32>,
    %c0_34 = arith.constant 0 : index
    %c144 = arith.constant 144 : index
    %39 = vector.load %arg8[%c0_34, %c144] : memref<4x512xf32, #tpu.memory_space<vmem>>, vector<4x256xf32>
    %c28 = arith.constant 28 : index
    %c0_35 = arith.constant 0 : index
    %40 = vector.load %arg10[%c28, %c0_35] : memref<36x256xf32, #tpu.memory_space<vmem>>, vector<4x256xf32>
    tpu.vector_store %arg10[%c28, %c0_35], %39 {strides = array<i32>} : memref<36x256xf32, #tpu.memory_space<vmem>>, vector<4x256xf32>,
    %c0_36 = arith.constant 0 : index
    %c145 = arith.constant 145 : index
    %41 = vector.load %arg8[%c0_36, %c145] : memref<4x512xf32, #tpu.memory_space<vmem>>, vector<4x256xf32>
    %42 = vector.broadcast %3 : vector<1x256xf32> to vector<4x256xf32>
    %43 = arith.mulf %41, %42 : vector<4x256xf32>
    %c32 = arith.constant 32 : index
    %c0_37 = arith.constant 0 : index
    %44 = vector.load %arg10[%c32, %c0_37] : memref<36x256xf32, #tpu.memory_space<vmem>>, vector<4x256xf32>
    tpu.vector_store %arg10[%c32, %c0_37], %43 {strides = array<i32>} : memref<36x256xf32, #tpu.memory_space<vmem>>, vector<4x256xf32>,
    %c0_38 = arith.constant 0 : index
    %c0_39 = arith.constant 0 : index
    %45 = vector.load %arg3[%c0_38, %c0_39] : memref<8x36xf32, #tpu.memory_space<vmem>>, vector<8x36xf32>
    %c0_40 = arith.constant 0 : index
    %c0_41 = arith.constant 0 : index
    %46 = vector.load %arg10[%c0_40, %c0_41] : memref<36x256xf32, #tpu.memory_space<vmem>>, vector<36x256xf32>
    %cst_42 = arith.constant dense<0.000000e+00> : vector<8x256xf32>
    %47 = tpu.matmul %45, %46, %cst_42 {dimension_numbers = #tpu.dot_dimension_numbers<[1], [0], [0], [1], [0, 0, 1, 1], [], []>} : vector<8x36xf32>, vector<36x256xf32>, vector<8x256xf32> -> vector<8x256xf32>
    %c0_43 = arith.constant 0 : index
    %c0_44 = arith.constant 0 : index
    %c0_45 = arith.constant 0 : index
    %48 = vector.load %arg4[%c0_43, %c0_44, %c0_45] : memref<2x8x1xf32, #tpu.memory_space<vmem>>, vector<1x8x1xf32>
    %49 = vector.shape_cast %48 : vector<1x8x1xf32> to vector<8x1xf32>
    %50 = vector.broadcast %49 : vector<8x1xf32> to vector<8x256xf32>
    %51 = arith.mulf %47, %50 : vector<8x256xf32>
    %c1_46 = arith.constant 1 : index
    %c0_47 = arith.constant 0 : index
    %c0_48 = arith.constant 0 : index
    %52 = vector.load %arg4[%c1_46, %c0_47, %c0_48] : memref<2x8x1xf32, #tpu.memory_space<vmem>>, vector<1x8x1xf32>
    %53 = vector.shape_cast %52 : vector<1x8x1xf32> to vector<8x1xf32>
    %54 = vector.broadcast %53 : vector<8x1xf32> to vector<8x256xf32>
    %55 = arith.addf %51, %54 : vector<8x256xf32>
    %cst_49 = arith.constant 0.000000e+00 : f32
    %56 = vector.broadcast %cst_49 : f32 to vector<8x256xf32>
    %57 = arith.maximumf %55, %56 : vector<8x256xf32>
    %c0_50 = arith.constant 0 : index
    %c128_51 = arith.constant 128 : index
    %58 = vector.load %arg9[%c0_50, %c128_51] : memref<8x512xf32, #tpu.memory_space<vmem>>, vector<8x256xf32>
    tpu.vector_store %arg9[%c0_50, %c128_51], %57 {strides = array<i32>} : memref<8x512xf32, #tpu.memory_space<vmem>>, vector<8x256xf32>,
    %c0_52 = arith.constant 0 : index
    %c111_53 = arith.constant 111 : index
    %59 = vector.load %arg9[%c0_52, %c111_53] : memref<8x512xf32, #tpu.memory_space<vmem>>, vector<8x256xf32>
    %60 = vector.broadcast %1 : vector<1x256xf32> to vector<8x256xf32>
    %61 = arith.mulf %59, %60 : vector<8x256xf32>
    %c0_54 = arith.constant 0 : index
    %c0_55 = arith.constant 0 : index
    %62 = vector.load %arg11[%c0_54, %c0_55] : memref<72x256xf32, #tpu.memory_space<vmem>>, vector<8x256xf32>
    tpu.vector_store %arg11[%c0_54, %c0_55], %61 {strides = array<i32>} : memref<72x256xf32, #tpu.memory_space<vmem>>, vector<8x256xf32>,
    %c0_56 = arith.constant 0 : index
    %c112_57 = arith.constant 112 : index
    %63 = vector.load %arg9[%c0_56, %c112_57] : memref<8x512xf32, #tpu.memory_space<vmem>>, vector<8x256xf32>
    %c8_58 = arith.constant 8 : index
    %c0_59 = arith.constant 0 : index
    %64 = vector.load %arg11[%c8_58, %c0_59] : memref<72x256xf32, #tpu.memory_space<vmem>>, vector<8x256xf32>
    tpu.vector_store %arg11[%c8_58, %c0_59], %63 {strides = array<i32>} : memref<72x256xf32, #tpu.memory_space<vmem>>, vector<8x256xf32>,
    %c0_60 = arith.constant 0 : index
    %c113_61 = arith.constant 113 : index
    %65 = vector.load %arg9[%c0_60, %c113_61] : memref<8x512xf32, #tpu.memory_space<vmem>>, vector<8x256xf32>
    %66 = vector.broadcast %3 : vector<1x256xf32> to vector<8x256xf32>
    %67 = arith.mulf %65, %66 : vector<8x256xf32>
    %c16_62 = arith.constant 16 : index
    %c0_63 = arith.constant 0 : index
    %68 = vector.load %arg11[%c16_62, %c0_63] : memref<72x256xf32, #tpu.memory_space<vmem>>, vector<8x256xf32>
    tpu.vector_store %arg11[%c16_62, %c0_63], %67 {strides = array<i32>} : memref<72x256xf32, #tpu.memory_space<vmem>>, vector<8x256xf32>,
    %c0_64 = arith.constant 0 : index
    %c127_65 = arith.constant 127 : index
    %69 = vector.load %arg9[%c0_64, %c127_65] : memref<8x512xf32, #tpu.memory_space<vmem>>, vector<8x256xf32>
    %70 = vector.broadcast %1 : vector<1x256xf32> to vector<8x256xf32>
    %71 = arith.mulf %69, %70 : vector<8x256xf32>
    %c24_66 = arith.constant 24 : index
    %c0_67 = arith.constant 0 : index
    %72 = vector.load %arg11[%c24_66, %c0_67] : memref<72x256xf32, #tpu.memory_space<vmem>>, vector<8x256xf32>
    tpu.vector_store %arg11[%c24_66, %c0_67], %71 {strides = array<i32>} : memref<72x256xf32, #tpu.memory_space<vmem>>, vector<8x256xf32>,
    %c0_68 = arith.constant 0 : index
    %c128_69 = arith.constant 128 : index
    %73 = vector.load %arg9[%c0_68, %c128_69] : memref<8x512xf32, #tpu.memory_space<vmem>>, vector<8x256xf32>
    %c32_70 = arith.constant 32 : index
    %c0_71 = arith.constant 0 : index
    %74 = vector.load %arg11[%c32_70, %c0_71] : memref<72x256xf32, #tpu.memory_space<vmem>>, vector<8x256xf32>
    tpu.vector_store %arg11[%c32_70, %c0_71], %73 {strides = array<i32>} : memref<72x256xf32, #tpu.memory_space<vmem>>, vector<8x256xf32>,
    %c0_72 = arith.constant 0 : index
    %c129_73 = arith.constant 129 : index
    %75 = vector.load %arg9[%c0_72, %c129_73] : memref<8x512xf32, #tpu.memory_space<vmem>>, vector<8x256xf32>
    %76 = vector.broadcast %3 : vector<1x256xf32> to vector<8x256xf32>
    %77 = arith.mulf %75, %76 : vector<8x256xf32>
    %c40 = arith.constant 40 : index
    %c0_74 = arith.constant 0 : index
    %78 = vector.load %arg11[%c40, %c0_74] : memref<72x256xf32, #tpu.memory_space<vmem>>, vector<8x256xf32>
    tpu.vector_store %arg11[%c40, %c0_74], %77 {strides = array<i32>} : memref<72x256xf32, #tpu.memory_space<vmem>>, vector<8x256xf32>,
    %c0_75 = arith.constant 0 : index
    %c143_76 = arith.constant 143 : index
    %79 = vector.load %arg9[%c0_75, %c143_76] : memref<8x512xf32, #tpu.memory_space<vmem>>, vector<8x256xf32>
    %80 = vector.broadcast %1 : vector<1x256xf32> to vector<8x256xf32>
    %81 = arith.mulf %79, %80 : vector<8x256xf32>
    %c48 = arith.constant 48 : index
    %c0_77 = arith.constant 0 : index
    %82 = vector.load %arg11[%c48, %c0_77] : memref<72x256xf32, #tpu.memory_space<vmem>>, vector<8x256xf32>
    tpu.vector_store %arg11[%c48, %c0_77], %81 {strides = array<i32>} : memref<72x256xf32, #tpu.memory_space<vmem>>, vector<8x256xf32>,
    %c0_78 = arith.constant 0 : index
    %c144_79 = arith.constant 144 : index
    %83 = vector.load %arg9[%c0_78, %c144_79] : memref<8x512xf32, #tpu.memory_space<vmem>>, vector<8x256xf32>
    %c56 = arith.constant 56 : index
    %c0_80 = arith.constant 0 : index
    %84 = vector.load %arg11[%c56, %c0_80] : memref<72x256xf32, #tpu.memory_space<vmem>>, vector<8x256xf32>
    tpu.vector_store %arg11[%c56, %c0_80], %83 {strides = array<i32>} : memref<72x256xf32, #tpu.memory_space<vmem>>, vector<8x256xf32>,
    %c0_81 = arith.constant 0 : index
    %c145_82 = arith.constant 145 : index
    %85 = vector.load %arg9[%c0_81, %c145_82] : memref<8x512xf32, #tpu.memory_space<vmem>>, vector<8x256xf32>
    %86 = vector.broadcast %3 : vector<1x256xf32> to vector<8x256xf32>
    %87 = arith.mulf %85, %86 : vector<8x256xf32>
    %c64 = arith.constant 64 : index
    %c0_83 = arith.constant 0 : index
    %88 = vector.load %arg11[%c64, %c0_83] : memref<72x256xf32, #tpu.memory_space<vmem>>, vector<8x256xf32>
    tpu.vector_store %arg11[%c64, %c0_83], %87 {strides = array<i32>} : memref<72x256xf32, #tpu.memory_space<vmem>>, vector<8x256xf32>,
    %c0_84 = arith.constant 0 : index
    %c0_85 = arith.constant 0 : index
    %89 = vector.load %arg5[%c0_84, %c0_85] : memref<8x72xf32, #tpu.memory_space<vmem>>, vector<8x72xf32>
    %c0_86 = arith.constant 0 : index
    %c0_87 = arith.constant 0 : index
    %90 = vector.load %arg11[%c0_86, %c0_87] : memref<72x256xf32, #tpu.memory_space<vmem>>, vector<72x256xf32>
    %cst_88 = arith.constant dense<0.000000e+00> : vector<8x256xf32>
    %91 = tpu.matmul %89, %90, %cst_88 {dimension_numbers = #tpu.dot_dimension_numbers<[1], [0], [0], [1], [0, 0, 1, 1], [], []>} : vector<8x72xf32>, vector<72x256xf32>, vector<8x256xf32> -> vector<8x256xf32>
    %c0_89 = arith.constant 0 : index
    %c0_90 = arith.constant 0 : index
    %c0_91 = arith.constant 0 : index
    %92 = vector.load %arg6[%c0_89, %c0_90, %c0_91] : memref<2x8x1xf32, #tpu.memory_space<vmem>>, vector<1x8x1xf32>
    %93 = vector.shape_cast %92 : vector<1x8x1xf32> to vector<8x1xf32>
    %94 = vector.broadcast %93 : vector<8x1xf32> to vector<8x256xf32>
    %95 = arith.mulf %91, %94 : vector<8x256xf32>
    %c1_92 = arith.constant 1 : index
    %c0_93 = arith.constant 0 : index
    %c0_94 = arith.constant 0 : index
    %96 = vector.load %arg6[%c1_92, %c0_93, %c0_94] : memref<2x8x1xf32, #tpu.memory_space<vmem>>, vector<1x8x1xf32>
    %97 = vector.shape_cast %96 : vector<1x8x1xf32> to vector<8x1xf32>
    %98 = vector.broadcast %97 : vector<8x1xf32> to vector<8x256xf32>
    %99 = arith.addf %95, %98 : vector<8x256xf32>
    %cst_95 = arith.constant 0.000000e+00 : f32
    %100 = vector.broadcast %cst_95 : f32 to vector<8x256xf32>
    %101 = arith.maximumf %99, %100 : vector<8x256xf32>
    %c0_96 = arith.constant 0 : index
    %c0_97 = arith.constant 0 : index
    %c0_98 = arith.constant 0 : index
    %102 = vector.load %arg7[%c0_96, %c0_97, %c0_98] : memref<1x8x256xf32, #tpu.memory_space<vmem>>, vector<1x8x256xf32>
    %103 = vector.shape_cast %102 : vector<1x8x256xf32> to vector<8x256xf32>
    %104 = vector.shape_cast %101 : vector<8x256xf32> to vector<1x8x256xf32>
    tpu.vector_store %arg7[%c0_96, %c0_97, %c0_98], %104 {strides = array<i32>} : memref<1x8x256xf32, #tpu.memory_space<vmem>>, vector<1x8x256xf32>,
    return
  }
  func.func @transform_0(%arg0: i32) -> (i32, i32, i32) {
    %c0_i32 = arith.constant 0 : i32
    %c0_i32_0 = arith.constant 0 : i32
    %c0_i32_1 = arith.constant 0 : i32
    return %arg0, %c0_i32, %c0_i32_0 : i32, i32, i32
  }
  func.func @transform_1(%arg0: i32) -> (i32, i32, i32) {
    %c0_i32 = arith.constant 0 : i32
    %c0_i32_0 = arith.constant 0 : i32
    %c0_i32_1 = arith.constant 0 : i32
    %c0_i32_2 = arith.constant 0 : i32
    return %c0_i32, %c0_i32_0, %c0_i32_1 : i32, i32, i32
  }
  func.func @transform_2(%arg0: i32) -> (i32, i32) {
    %c0_i32 = arith.constant 0 : i32
    %c0_i32_0 = arith.constant 0 : i32
    %c0_i32_1 = arith.constant 0 : i32
    return %c0_i32, %c0_i32_0 : i32, i32
  }
  func.func @transform_3(%arg0: i32) -> (i32, i32, i32) {
    %c0_i32 = arith.constant 0 : i32
    %c0_i32_0 = arith.constant 0 : i32
    %c0_i32_1 = arith.constant 0 : i32
    %c0_i32_2 = arith.constant 0 : i32
    return %c0_i32, %c0_i32_0, %c0_i32_1 : i32, i32, i32
  }
  func.func @transform_4(%arg0: i32) -> (i32, i32) {
    %c0_i32 = arith.constant 0 : i32
    %c0_i32_0 = arith.constant 0 : i32
    %c0_i32_1 = arith.constant 0 : i32
    return %c0_i32, %c0_i32_0 : i32, i32
  }
  func.func @transform_5(%arg0: i32) -> (i32, i32, i32) {
    %c0_i32 = arith.constant 0 : i32
    %c0_i32_0 = arith.constant 0 : i32
    %c0_i32_1 = arith.constant 0 : i32
    %c0_i32_2 = arith.constant 0 : i32
    return %c0_i32, %c0_i32_0, %c0_i32_1 : i32, i32, i32
  }
  func.func @transform_6(%arg0: i32) -> (i32, i32, i32) {
    %c0_i32 = arith.constant 0 : i32
    %c0_i32_0 = arith.constant 0 : i32
    %c0_i32_1 = arith.constant 0 : i32
    return %arg0, %c0_i32, %c0_i32_0 : i32, i32, i32
  }
}

</mosaic_0001>

<bundles_post_ra>
// kernel: tpu_custom_call.1
= control target key start
LH: loop header
LB: loop body
LE: loop exit
PB: predicated region body
PF: predicated region fallthrough
CT: control target
= control target key end

     0   :  { %11 = vsyncpa [#allocation7], 0  ;;  %s1539_s0 = inlined_call_operand.vmem [shape: f32[2,4,256], index: 0, kind: input, shape index: {}]   ;;  %s1540_s1 = inlined_call_operand.vmem [shape: f32[2,1,256], index: 1, kind: input, shape index: {}]   ;;  %s1541_s2 = inlined_call_operand.vmem [shape: f32[8,36], index: 2, kind: input, shape index: {}]   ;;  %s1542_s3 = inlined_call_operand.vmem [shape: f32[2,8,1], index: 3, kind: input, shape index: {}]   ;;  %s1543_s4 = inlined_call_operand.vmem [shape: f32[8,72], index: 4, kind: input, shape index: {}]   ;;  %s1544_s5 = inlined_call_operand.vmem [shape: f32[2,8,1], index: 5, kind: input, shape index: {}]   ;;  %s1545_s6 = inlined_call_operand.hbm [shape: f32[2,8,256], index: 6, kind: output, shape index: {}]  }
   0x1   :  { %13 = vsyncpa [#allocation7 + $0x1], 0  ;;  %s1244_s21 = smov 0   ;;  %s1246_s22 = smov 0  }
   0x2   :  { %s1248_s23 = smov 0   ;;  %s1250_s24 = smov 0  }
   0x3 LB: > { %s1265_s25 = sadd.s32 4294967295, %s1196_s24   ;;  %s998_s26 = sadd.s32 4294967294, %s1196_s24   ;;  %s1196_s24 = sphi %s1250_s24, %s1551_s24   ;;  %s1192_s23 = sphi %s1248_s23, %s1550_s23   ;;  %s1188_s22 = sphi %s1246_s22, %s1549_s22   ;;  %s1184_s21 = sphi %s1244_s21, %s1548_s21  }
   0x4   : > { %s1269_s27 = sadd.s32 1, %s1196_s24   ;;  %s157_s28 = sadd.s32 1, %s1192_s23 }
   0x5   : > { %s154_s29 = ssub.s32 %s1196_s24, %s1269_s27  ;;  %p167_p0 = scmp.ne.s32.totalorder %s1192_s23, %s1188_s22 }
   0x6   : > { %p155_p1 = scmp.eq.s32.totalorder %s154_s29, 0  ;;  %p168_p2 = scmp.eq.s32.totalorder %s1265_s25, 1 }
   0x7   : > { %p173_p3 = scmp.ne.s32.totalorder %s1188_s22, %s1184_s21  ;;  %p174_p4 = scmp.eq.s32.totalorder %s998_s26, 1 }
   0x8   : > { %s1280_s30 = scalar_select %p155_p1, %s1192_s23, %s157_s28  }
   0x9   : > { %p1282_p5 = por %p168_p2, %p167_p0  ;;  %p1286_p6 = por %p174_p4, %p173_p3 }
   0xa   : > { %p1001_p7 = scmp.ge.s32.totalorder %s1196_s24, 1  ;;  %p215_p8 = scmp.lt.s32.totalorder %s1196_s24, 3 }
   0xc   : > { %p216_p9 = pnand %p1001_p7, %p215_p8 }
   0xd   : > { %v262_v0 = vlaneseq (!%p216_p9)  ;;  %v1198_v2 = vmov (!%p216_p9), 0.0   ;;  %v250_v3 = vld [vmem:[%s1540_s1] sm:$0x3] (!%p216_p9)  ;;  %v1005_v4 = vld [vmem:[%s1540_s1 + $0x2] sm:$0x3] (!%p216_p9)  ;;  %p245_p10 = scmp.lt.s32.totalorder (!%p216_p9), %s1265_s25, 1 }
   0xe   : > { %219 = sbr.rel (%p216_p9) target bundleno = 904 (0x388), region = 44  ;;  %253 = vst [vmem:[#allocation2] sm:$0xf] (!%p216_p9), %v1198_v2  ;;  %254 = vst [vmem:[#allocation2 + $0xc] sm:$0xf] (!%p216_p9), %v1198_v2  ;;  %567 = vmatprep.mubr.f32.mxu0 (!%p216_p9), %v1198_v2  ;;  %896 = vmatprep.mubr.f32.mxu1 (!%p216_p9), %v1198_v2  ;;  %s1199_s18 = smov (!%p216_p9), 127  }
   0xf   : > { %v263_v1 = vshrl.u32 (!%p216_p9), %v262_v0, 7  ;;  %s1200_s19 = smov (!%p216_p9), 111   ;;  %s1201_s20 = smov (!%p216_p9), 113   ;;  %vm357_vm0 = vcmask (!%p216_p9), 1039360   ;;  %vm274_vm1 = vcmask (!%p216_p9), 908288   ;;  %vm330_vm2 = vcmask (!%p216_p9), 924672  }
  0x10   : > { %s1202_s26 = smov (!%p216_p9), 15   ;;  %s1203_s28 = smov (!%p216_p9), 1   ;;  %vm373_vm3 = vcmask (!%p216_p9), 7168   ;;  %vm308_vm4 = vcmask (!%p216_p9), 130048   ;;  %vm345_vm5 = vcmask (!%p216_p9), 121856   ;;  %vm449_vm6 = vcmask (!%p216_p9), 916480  }
  0x11   : > { %v264_v5 = vsub.s32 (!%p216_p9), 0, %v263_v1  ;;  %v268_v6 = vsub.s32 (!%p216_p9), 1, %v263_v1  ;;  %s1204_s29 = smov (!%p216_p9), 17   ;;  %s1205_s9 = smov (!%p216_p9), 16   ;;  %vm289_vm7 = vcmask (!%p216_p9), 138240   ;;  %vm496_vm8 = vcmask (!%p216_p9), 1043456  }
  0x12   : > { %s1206_s10 = smov (!%p216_p9), 112   ;;  %vm492_vm9 = vcmask (!%p216_p9), 293888   ;;  %vm828_vm10 = vcmask (!%p216_p9), 588800  }
  0x13   : > { %v1304_v7 = vrot.slane (!%p216_p9), %v250_v3, %v264_v5  ;;  %v1306_v8 = vrot.slane (!%p216_p9), %v250_v3, %v268_v6  ;;  %v1308_v9 = vrot.slane (!%p216_p9), %v1005_v4, %v264_v5  ;;  %v1310_v10 = vrot.slane (!%p216_p9), %v1005_v4, %v268_v6 }
  0x15   : > { %s246_s13 = scalar_select %p245_p10, %s1265_s25, 1  ;;  %v270_v11 = vcombine.low %v1304_v7, %v1306_v8  ;;  %v326_v13 = vcombine.low %v1308_v9, %v1310_v10  ;;  %v1131_v17 = vld [vmem:[#allocation2 + $0xc] ss:$0 sps:$4 sm:$0xff]  }
  0x16   : > { %v413_v32 = vld [vmem:[#allocation2 + $0xc] sm:$0xf] }
  0x17   : > { %s1017_s14 = sshll.u32 %s246_s13, 3  ;;  %354 = vrot.lane.b32.xlu1 %v270_v11, %s1199_s18  ;;  %271 = vrot.lane.b32.xlu0 %v270_v11, %s1200_s19  ;;  %v387_v44 = vld [vmem:[#allocation2 + $0xc] sm:$0xf] }
  0x18   : > { %s249_s17 = scalar_lea.vmem %s1539_s0, %s1017_s14 }
  0x19   : > { %v1317_v12 = vld [vmem:[%s249_s17] sm:$0xff] }
  0x1a   : > { %258 = vst [vmem:[#allocation2 + $0x4] sm:$0xff] %v1317_v12  ;;  %384 = vst [vmem:[#allocation4 + $0x20] sm:$0xf] %v1317_v12  ;;  %v382_v38 = vcombine.high %v1317_v12, %v1317_v12  ;;  %v441_v6 = vcombine.low %v1317_v12, %v1317_v12 }
  0x1b   : > { %327 = vrot.lane.b32.xlu0 %v326_v13, %s1201_s20  ;;  %414 = vrot.lane.b32.xlu1 %v270_v11, %s1202_s26  ;;  %v457_v11 = vld [vmem:[#allocation2 + $0xc] sm:$0xf] }
  0x1c   : > { %385 = vst [vmem:[#allocation4 + $0x28] sm:$0xf] %v382_v38 }
  0x1f   : > { %388 = vrot.lane.b32.xlu0 %v326_v13, %s1203_s28  ;;  %458 = vrot.lane.b32.xlu1 %v326_v13, %s1204_s29 }
  0x21   : > { %v1129_v14 = vld [vmem:[#allocation2 + $0x8] ss:$0 sps:$4 sm:$0xff]   ;;  %v296_v15 = vld [vmem:[#allocation2] sm:$0xff] }
  0x22   : > { %v300_v16 = vcombine.low %v296_v15, %v296_v15  ;;  %v260_v20 = vld [vmem:[#allocation2 + $0x8] sm:$0xf] }
  0x23   : > { %306 = vrot.lane.b32.xlu1 %v1129_v14, %s1205_s9  ;;  %304 = vrot.lane.b32.xlu0 %v296_v15, %s1205_s9  ;;  %v316_v27 = vld [vmem:[#allocation2 + $0x8] sm:$0xf] }
  0x24   : > { %v353_v34 = vld [vmem:[#allocation2 + $0x8] sm:$0xf] }
  0x25   : > { %v1009_v14 = vld [vmem:[%s1542_s3 + $0x8] sm:$0xff] }
  0x27   : > { %302 = vrot.lane.b32.xlu1 %v300_v16, %s1205_s9  ;;  %445 = vrot.lane.b32.xlu0 %v1317_v12, %s1206_s10 }
  0x2b   : > { %447 = vrot.lane.b32.xlu1 %v1131_v17, %s1206_s10 }
  0x89   : > { %v355_v18 = vpop.permute.xlu1 %354  ;;  %v272_v19 = vpop.permute.xlu0 %271 }
  0x8a   : > { %v356_v21 = vrot.slane %v355_v18, 4  ;;  %v273_v22 = vrot.slane %v272_v19, 4 }
  0x8c   : > { %v358_v23 = vsel %vm357_vm0, %v356_v21, %v355_v18  ;;  %v279_v24 = vmul.f32 %v273_v22, %v260_v20  ;;  %v275_v29 = vsel %vm274_vm1, %v273_v22, %v272_v19  ;;  %v362_v42 = vmul.f32 %v356_v21, %v353_v34 }
  0x8d   : > { %v361_v25 = vmul.f32 %v358_v23, %v296_v15  ;;  %v328_v26 = vpop.permute.xlu0 %327  ;;  %v415_v28 = vpop.permute.xlu1 %414  ;;  %v278_v35 = vmul.f32 %v296_v15, %v275_v29 }
  0x8e   : > { %v329_v30 = vrot.slane %v328_v26, 4  ;;  %287 = vrot.lane.b32.xlu1 %v279_v24, %s1204_s29  ;;  %v416_v31 = vrot.slane %v415_v28, 4  ;;  %v366_v50 = vcombine.low %v362_v42, %v362_v42 }
  0x8f   : > { %369 = vrot.lane.b32.xlu0 %v361_v25, %s1203_s28  ;;  %v282_v57 = vcombine.high %v278_v35, %v278_v35  ;;  %v365_v62 = vcombine.low %v361_v25, %v361_v25 }
  0x90   : > { %v335_v33 = vmul.f32 %v329_v30, %v316_v27  ;;  %v331_v39 = vsel %vm330_vm2, %v329_v30, %v328_v26  ;;  %v421_v40 = vmul.f32 %v416_v31, %v413_v32  ;;  %v417_v59 = vsel %vm345_vm5, %v416_v31, %v415_v28 }
  0x91   : > { %v389_v36 = vpop.permute.xlu0 %388  ;;  %v459_v37 = vpop.permute.xlu1 %458  ;;  %v334_v43 = vmul.f32 %v331_v39, %v296_v15  ;;  %v420_v63 = vmul.f32 %v417_v59, %v1317_v12  ;;  %v1207_v15 = vmov 0  }
  0x92   : > { %343 = vrot.lane.b32.xlu1 %v335_v33, %s1202_s26  ;;  %v390_v41 = vrot.slane %v389_v36, 4  ;;  %v460_v54 = vrot.slane %v459_v37, 4  ;;  %1092 = vset.pattern.permute.xlu0 %v1207_v15 }
  0x93   : > { %283 = vrot.lane.b32.xlu0 %v278_v35, %s1204_s29  ;;  %v338_v0 = vcombine.high %v334_v43, %v334_v43  ;;  %v424_v3 = vcombine.high %v420_v63, %v420_v63  ;;  %1093 = vset.pattern.permute.xlu1 %v1207_v15 }
  0x94   : > { %v391_v47 = vsel %vm373_vm3, %v390_v41, %v389_v36  ;;  %v395_v49 = vmul.f32 %v390_v41, %v387_v44  ;;  %v461_v61 = vsel %vm289_vm7, %v460_v54, %v459_v37  ;;  %v465_v13 = vmul.f32 %v460_v54, %v457_v11 }
  0x95   : > { %v307_v45 = vpop.permute.xlu1 %306  ;;  %v305_v46 = vpop.permute.xlu0 %304  ;;  %v394_v51 = vmul.f32 %v391_v47, %v1317_v12  ;;  %v464_v1 = vmul.f32 %v461_v61, %v1317_v12  ;;  %v574_v12 = vld [vmem:[%s1542_s3] sm:$0xff] }
  0x96   : > { %429 = vrot.lane.b32.xlu1 %v421_v40, %s1201_s20  ;;  %v310_v48 = vsel %vm308_vm4, %v305_v46, %v307_v45  ;;  %v399_v56 = vcombine.low %v395_v49, %v395_v49 }
  0x97   : > { %339 = vrot.lane.b32.xlu0 %v334_v43, %s1202_s26  ;;  %314 = vst [vmem:[#allocation4 + $0x8] sm:$0xf0] %v310_v48  ;;  %v468_v4 = vcombine.high %v464_v1, %v464_v1  ;;  %v398_v5 = vcombine.low %v394_v51, %v394_v51 }
  0x99   : > { %v303_v52 = vpop.permute.xlu1 %302  ;;  %v1352_v55 = vpop.permute.xlu0 %445 }
  0x9a   : > { %371 = vrot.lane.b32.xlu1 %v366_v50, %s1203_s28  ;;  %v309_v53 = vsel %vm308_vm4, %v303_v52, %v305_v46 }
  0x9b   : > { %402 = vrot.lane.b32.xlu0 %v394_v51, %s1199_s18  ;;  %313 = vst [vmem:[#allocation4] sm:$0xf0] %v309_v53 }
  0x9d   : > { %v448_v58 = vpop.permute.xlu1 %447 }
  0x9e   : > { %404 = vrot.lane.b32.xlu1 %v399_v56, %s1199_s18  ;;  %v451_v60 = vsel %vm449_vm6, %v1352_v55, %v448_v58 }
  0x9f   : > { %285 = vrot.lane.b32.xlu0 %v282_v57, %s1204_s29  ;;  %455 = vst [vmem:[#allocation4 + $0x38] sm:$0xf0] %v451_v60 }
  0xa2   : > { %367 = vrot.lane.b32.xlu1 %v365_v62, %s1203_s28 }
  0xa3   : > { %341 = vrot.lane.b32.xlu0 %v338_v0, %s1202_s26 }
  0xa6   : > { %425 = vrot.lane.b32.xlu1 %v420_v63, %s1201_s20 }
  0xa7   : > { %427 = vrot.lane.b32.xlu0 %v424_v3, %s1201_s20 }
  0xaa   : > { %471 = vrot.lane.b32.xlu1 %v468_v4, %s1200_s19 }
  0xab   : > { %400 = vrot.lane.b32.xlu0 %v398_v5, %s1199_s18 }
  0xae   : > { %469 = vrot.lane.b32.xlu1 %v464_v1, %s1200_s19 }
  0xaf   : > { %443 = vrot.lane.b32.xlu0 %v441_v6, %s1206_s10 }
  0xb2   : > { %586 = vperm.xlu1 %1093, %v1009_v14  }
  0xb3   : > { %473 = vrot.lane.b32.xlu0 %v465_v13, %s1200_s19 }
  0xb6   : > { %598 = vrot.lane.b32.xlu1 %v1304_v7, %s1200_s19 }
  0xb7   : > { %577 = vperm.xlu0 %1092, %v574_v12  }
  0xba   : > { %645 = vrot.lane.b32.xlu1 %v1308_v9, %s1201_s20 }
  0xbb   : > { %600 = vrot.lane.b32.xlu0 %v1306_v8, %s1200_s19 }
  0xbe   : > { %674 = vrot.lane.b32.xlu1 %v1304_v7, %s1199_s18 }
  0xbf   : > { %647 = vrot.lane.b32.xlu0 %v1310_v10, %s1201_s20 }
  0xc2   : > { %707 = vrot.lane.b32.xlu1 %v1308_v9, %s1203_s28 }
  0xc3   : > { %676 = vrot.lane.b32.xlu0 %v1306_v8, %s1199_s18 }
  0xc6   : > { %736 = vrot.lane.b32.xlu1 %v1304_v7, %s1202_s26 }
  0xc7   : > { %709 = vrot.lane.b32.xlu0 %v1310_v10, %s1203_s28 }
  0xca   : > { %783 = vrot.lane.b32.xlu1 %v1308_v9, %s1204_s29 }
  0xcb   : > { %738 = vrot.lane.b32.xlu0 %v1306_v8, %s1202_s26 }
  0xcf   : > { %785 = vrot.lane.b32.xlu0 %v1310_v10, %s1204_s29 }
  0xd3   : > { %630 = vrot.lane.b32.xlu0 %v1198_v2, %s1205_s9 }
 0x100   : > { %v288_v16 = vpop.permute.xlu1 %287 }
 0x101   : > { %v370_v17 = vpop.permute.xlu0 %369 }
 0x104   : > { %v344_v18 = vpop.permute.xlu1 %343 }
 0x105   : > { %v284_v19 = vpop.permute.xlu0 %283 }
 0x108   : > { %v430_v20 = vpop.permute.xlu1 %429 }
 0x109   : > { %v340_v21 = vpop.permute.xlu0 %339 }
 0x10c   : > { %v372_v22 = vpop.permute.xlu1 %371 }
 0x10d   : > { %v375_v7 = vsel %vm373_vm3, %v370_v17, %v372_v22  ;;  %v403_v23 = vpop.permute.xlu0 %402 }
 0x10e   : > { %379 = vst [vmem:[#allocation4 + $0x18] sm:$0xf0] %v375_v7 }
 0x110   : > { %v405_v8 = vpop.permute.xlu1 %404 }
 0x111   : > { %v407_v9 = vsel %vm357_vm0, %v403_v23, %v405_v8  ;;  %v286_v24 = vpop.permute.xlu0 %285 }
 0x112   : > { %411 = vst [vmem:[#allocation4 + $0x28] sm:$0xf0] %v407_v9  ;;  %v290_v10 = vsel %vm289_vm7, %v284_v19, %v286_v24  ;;  %v291_v25 = vsel %vm289_vm7, %v286_v24, %v288_v16 }
 0x113   : > { %294 = vst [vmem:[#allocation4] sm:$0xf] %v290_v10  ;;  %295 = vst [vmem:[#allocation4 + $0x8] sm:$0xf] %v291_v25 }
 0x114   : > { %v368_v26 = vpop.permute.xlu1 %367 }
 0x115   : > { %v374_v27 = vsel %vm373_vm3, %v368_v26, %v370_v17  ;;  %v342_v28 = vpop.permute.xlu0 %341 }
 0x116   : > { %378 = vst [vmem:[#allocation4 + $0x10] sm:$0xf0] %v374_v27  ;;  %v346_v29 = vsel %vm345_vm5, %v340_v21, %v342_v28  ;;  %v347_v30 = vsel %vm345_vm5, %v342_v28, %v344_v18 }
 0x117   : > { %350 = vst [vmem:[#allocation4 + $0x10] sm:$0xf] %v346_v29  ;;  %351 = vst [vmem:[#allocation4 + $0x18] sm:$0xf] %v347_v30 }
 0x118   : > { %v426_v31 = vpop.permute.xlu1 %425 }
 0x119   : > { %v428_v32 = vpop.permute.xlu0 %427  ;;  %v487_v48 = vld [vmem:[#allocation4 + $0x28] sm:$0xff] }
 0x11a   : > { %v431_v33 = vsel %vm330_vm2, %v426_v31, %v428_v32  ;;  %v432_v34 = vsel %vm330_vm2, %v428_v32, %v430_v20  ;;  %v483_v37 = vld [vmem:[#allocation4 + $0x8] sm:$0xff]  ;;  %v482_v40 = vld [vmem:[#allocation4] sm:$0xff] }
 0x11b   : > { %435 = vst [vmem:[#allocation4 + $0x30] sm:$0xf] %v431_v33  ;;  %436 = vst [vmem:[#allocation4 + $0x38] sm:$0xf] %v432_v34 }
 0x11c   : > { %v472_v35 = vpop.permute.xlu1 %471 }
 0x11d   : > { %v401_v36 = vpop.permute.xlu0 %400 }
 0x11e   : > { %v406_v38 = vsel %vm357_vm0, %v401_v36, %v403_v23  ;;  %v485_v39 = vld [vmem:[#allocation4 + $0x18] sm:$0xff]  ;;  %v484_v41 = vld [vmem:[#allocation4 + $0x10] sm:$0xff] }
 0x11f   : > { %410 = vst [vmem:[#allocation4 + $0x20] sm:$0xf0] %v406_v38  ;;  %v1019_v42 = vpack.c.bf16 %v485_v39, %v483_v37  ;;  %v1021_v43 = vpack.c.bf16 %v484_v41, %v482_v40 }
 0x120   : > { %v470_v44 = vpop.permute.xlu1 %469 }
 0x121   : > { %v475_v45 = vsel %vm274_vm1, %v470_v44, %v472_v35  ;;  %1020 = vmatprep.subr.bf16.mxu0 %v1019_v42  ;;  %v444_v46 = vpop.permute.xlu0 %443 }
 0x122   : > { %479 = vst [vmem:[#allocation4 + $0x40] sm:$0xf] %v475_v45  ;;  %v450_v47 = vsel %vm449_vm6, %v444_v46, %v1352_v55  ;;  %1022 = vmatpush1.bf16.msra.mxu0 %v1021_v43  ;;  %v489_v49 = vld [vmem:[#allocation4 + $0x38] sm:$0xff]  ;;  %v481_v55 = vld [vmem:[%s1541_s2] sm:$0xff] }
 0x123   : > { %454 = vst [vmem:[#allocation4 + $0x30] sm:$0xf0] %v450_v47  ;;  %v1023_v50 = vpack.c.bf16 %v489_v49, %v487_v48  ;;  %v903_v47 = vld [vmem:[%s1544_s5] sm:$0xff]  ;;  %v1011_v49 = vld [vmem:[%s1544_s5 + $0x8] sm:$0xff] }
 0x125   : > { %1024 = vmatprep.subr.bf16.mxu0 %v1023_v50  ;;  %v474_v51 = vpop.permute.xlu0 %473 }
 0x126   : > { %v476_v52 = vsel %vm274_vm1, %v472_v35, %v474_v51  ;;  %v486_v53 = vld [vmem:[#allocation4 + $0x20] sm:$0xff] }
 0x127   : > { %480 = vst [vmem:[#allocation4 + $0x48] sm:$0xf] %v476_v52 }
 0x129   : > { %v490_v58 = vld [vmem:[#allocation4 + $0x40] sm:$0xf] }
 0x12a   : > { %v488_v54 = vld [vmem:[#allocation4 + $0x30] sm:$0xff] }
 0x12b   : > { %v1025_v56 = vpack.c.bf16 %v488_v54, %v486_v53 }
 0x12d   : > { %1026 = vmatpush1.bf16.msra.mxu0 %v1025_v56 }
 0x12e   : > { %v491_v57 = vld [vmem:[#allocation4 + $0x48] sm:$0xf] }
 0x12f   : > { %1006 = vmatprep.subr.msk.mxu0 %vm496_vm8, %v491_v57 }
 0x131   : > { %1007 = vmatpush1.msk.msra.mxu0 %vm496_vm8, %v490_v58  ;;  %v587_v59 = vpop.permute.xlu1 %586 }
 0x132   : > { %1008 = vmatmul.mubr.msk.f32.vlgmr.msra.gmra.mrb[0].mxu0 %vm492_vm9, %v481_v55 }
 0x135   : > { %v599_v60 = vpop.permute.xlu1 %598 }
 0x136   : > { %v606_v61 = vmul.f32 0.0, %v599_v60  ;;  %v578_v3 = vpop.permute.xlu0 %577 }
 0x138   : > { %612 = vrot.lane.b32.xlu1 %v606_v61, %s1204_s29 }
 0x139   : > { %v646_v62 = vpop.permute.xlu1 %645 }
 0x13a   : > { %v653_v63 = vmul.f32 0.0, %v646_v62  ;;  %v601_v4 = vpop.permute.xlu0 %600 }
 0x13b   : > { %v602_v19 = vsel %vm274_vm1, %v599_v60, %v601_v4 }
 0x13c   : > { %659 = vrot.lane.b32.xlu1 %v653_v63, %s1202_s26 }
 0x13d   : > { %v675_v0 = vpop.permute.xlu1 %674 }
 0x13e   : > { %v682_v1 = vmul.f32 0.0, %v675_v0  ;;  %v648_v5 = vpop.permute.xlu0 %647 }
 0x13f   : > { %v649_v21 = vsel %vm330_vm2, %v646_v62, %v648_v5 }
 0x140   : > { %688 = vrot.lane.b32.xlu0 %v682_v1, %s1203_s28 }
 0x141   : > { %v708_v26 = vpop.permute.xlu1 %707 }
 0x142   : > { %v677_v12 = vpop.permute.xlu0 %676 }
 0x143   : > { %v678_v17 = vsel %vm357_vm0, %v675_v0, %v677_v12 }
 0x145   : > { %v737_v32 = vpop.permute.xlu1 %736 }
 0x146   : > { %v710_v27 = vpop.permute.xlu0 %709 }
 0x147   : > { %v711_v30 = vsel %vm373_vm3, %v708_v26, %v710_v27  ;;  %v717_v33 = vmul.f32 0.0, %v710_v27 }
 0x149   : > { %v784_v42 = vpop.permute.xlu1 %783 }
 0x14a   : > { %v739_v35 = vpop.permute.xlu0 %738 }
 0x14b   : > { %v740_v37 = vsel %vm345_vm5, %v737_v32, %v739_v35  ;;  %v746_v40 = vmul.f32 0.0, %v739_v35 }
 0x14e   : > { %v786_v43 = vpop.permute.xlu0 %785 }
 0x14f   : > { %v793_v45 = vmul.f32 0.0, %v786_v43  ;;  %v787_v46 = vsel %vm289_vm7, %v784_v42, %v786_v43 }
 0x152   : > { %v631_v50 = vpop.permute.xlu0 %630 }
 0x1aa   : > { %v613_v51 = vpop.permute.xlu1 %612 }
 0x1ae   : > { %v660_v53 = vpop.permute.xlu1 %659 }
 0x1b2   : > { %v689_v52 = vpop.permute.xlu0 %688 }
 0x205   : > { %v569_v6 = vpop.f32.mrb[0].mxu0 }
 0x206   : > { %v580_v11 = vmul.f32 %v578_v3, %v569_v6  ;;  %v571_v13 = vpop.f32.mrb[1].mxu0 }
 0x207   : > { %v581_v14 = vmul.f32 %v578_v3, %v571_v13 }
 0x208   : > { %v589_v15 = vadd.f32 %v587_v59, %v580_v11 }
 0x209   : > { %v590_v16 = vadd.f32 %v587_v59, %v581_v14 }
 0x20a   : > { %v1426_v18 = vmax.f32 %v589_v15, 0.0 }
 0x20b   : > { %v1429_v20 = vmax.f32 %v590_v16, 0.0 }
 0x20c   : > { %v607_v22 = vmul.f32 %v602_v19, %v1426_v18  ;;  %v683_v8 = vmul.f32 %v678_v17, %v1426_v18  ;;  %v654_v10 = vmul.f32 %v649_v21, %v1426_v18  ;;  %v715_v31 = vmul.f32 %v708_v26, %v1426_v18 }
 0x20d   : > { %v1094_v7 = vpack.i.bf16 %v1429_v20, %v1426_v18  ;;  %v608_v23 = vmul.f32 %v601_v4, %v1429_v20  ;;  %v684_v9 = vmul.f32 %v677_v12, %v1429_v20  ;;  %v655_v25 = vmul.f32 %v648_v5, %v1429_v20 }
 0x20e   : > { %v744_v34 = vmul.f32 %v737_v32, %v1426_v18  ;;  %v716_v36 = vmul.f32 %v711_v30, %v1429_v20  ;;  %v1114_v38 = vpack.i.bf16 %v1198_v2, %v1429_v20  ;;  %v745_v39 = vmul.f32 %v740_v37, %v1429_v20 }
 0x20f   : > { %1095 = vrot.lane.b32.xlu0 %v1094_v7, %s1205_s9  ;;  %v1099_v24 = vpack.i.bf16 %v608_v23, %v607_v22  ;;  %v1109_v28 = vpack.i.bf16 %v684_v9, %v683_v8  ;;  %v1104_v29 = vpack.i.bf16 %v655_v25, %v654_v10  ;;  %v792_v2 = vmul.f32 %v787_v46, %v1429_v20 }
 0x210   : > { %v1119_v41 = vpack.i.bf16 %v717_v33, %v716_v36  ;;  %v1124_v44 = vpack.i.bf16 %v746_v40, %v745_v39  ;;  %v791_v48 = vmul.f32 %v784_v42, %v1426_v18  ;;  %v809_v42 = vld [vmem:[%s1543_s4] sm:$0xff] }
 0x211   : > { %1100 = vrot.lane.b32.xlu1 %v1099_v24, %s1204_s29  ;;  %s242_s29 = sand.u32 1, %s1188_s22  }
 0x212   : > { %s1002_s9 = sshll.u32 %s242_s29, 4  ;;  %s925_s16 = scalar_lea.sflag [#allocation7], %s242_s29 }
 0x213   : > { %1110 = vrot.lane.b32.xlu0 %v1109_v28, %s1203_s28  ;;  %s244_s11 = scalar_lea.vmem [#allocation6], %s1002_s9 }
 0x214   : > { %s939_s12 = sshll.u32 %s244_s11, 4  ;;  %s1499_s12 = int_to_ptr.vmem [resolvable:$true] %s939_s12 }
 0x215   : > { %1105 = vrot.lane.b32.xlu1 %v1104_v29, %s1202_s26  ;;  %s1134_s17 = scalar_lea.vmem %s1499_s12, 256 }
 0x216   : > { %p1135_p11 = scmp.ne.s32.totalorder %s1499_s12, %s1134_s17 }
 0x217   : > { %721 = vrot.lane.b32.xlu0 %v715_v31, %s1199_s18 }
 0x218   : > { %p1136_p12 = pnand %p1135_p11, %p1282_p5 }
 0x219   : > { %750 = vrot.lane.b32.xlu1 %v744_v34, %s1201_s20 }
 0x21a   : > { %p1137_p13 = pneg %p1136_p12 }
 0x21b   : > { %1115 = vrot.lane.b32.xlu0 %v1114_v38, %s1206_s10 }
 0x21d   : > { %1120 = vrot.lane.b32.xlu1 %v1119_v41, %s1199_s18 }
 0x21f   : > { %768 = vrot.lane.b32.xlu0 %v1426_v18, %s1206_s10  ;;  %s1018_s10 = sshll.u32 %s1265_s25, 8  ;;  %s1208_s25 = smov [#allocation6]  }
 0x220   : > { %s1497_s15 = scalar_lea.hbm %s1545_s6, %s1018_s10  ;;  %s1138_s26 = sshll.u32 %s1208_s25, 4  ;;  %s1139_s26 = int_to_ptr.vmem [resolvable:$false] %s1138_s26 }
 0x221   : > { %1125 = vrot.lane.b32.xlu1 %v1124_v44, %s1201_s20  ;;  %s1140_s18 = scalar_lea.vmem %s1139_s26, 512  ;;  %p1141_p0 = scmp.lt.s32.totalorder %s1499_s12, %s1139_s26 }
 0x222   : > { %p1142_p1 = scmp.lt.s32.totalorder %s1140_s18, %s1134_s17 }
 0x223   : > { %801 = vrot.lane.b32.xlu0 %v793_v45, %s1200_s19 }
 0x224   : > { %p1143_p2 = por %p1142_p1, %p1141_p0 }
 0x225   : > { %799 = vrot.lane.b32.xlu1 %v792_v2, %s1200_s19 }
 0x226   : > { %p1144_p3 = pnand %p1143_p2, %p1137_p13 }
 0x227   : > { %906 = vperm.xlu0 %1092, %v903_v47  }
 0x229   : > { %797 = vrot.lane.b32.xlu1 %v791_v48, %s1200_s19 }
 0x22d   : > { %915 = vperm.xlu1 %1093, %v1011_v49  }
 0x281   : > { %v1096_v54 = vpop.permute.xlu0 %1095 }
 0x282   : > { %v1098_v56 = vunpack.i.h.bf16 %v1096_v54  ;;  %v1097_v57 = vunpack.i.l.bf16 %v1096_v54 }
 0x283   : > { %v1101_v55 = vpop.permute.xlu1 %1100 }
 0x284   : > { %v1103_v58 = vunpack.i.h.bf16 %v1101_v55  ;;  %v1102_v59 = vunpack.i.l.bf16 %v1101_v55  ;;  %v637_v61 = vsel %vm308_vm4, %v1097_v57, %v1098_v56  ;;  %v636_v62 = vsel %vm308_vm4, %v631_v50, %v1097_v57 }
 0x285   : > { %v1111_v60 = vpop.permute.xlu0 %1110 }
 0x286   : > { %v1113_v63 = vunpack.i.h.bf16 %v1111_v60  ;;  %v1112_v0 = vunpack.i.l.bf16 %v1111_v60  ;;  %v619_v1 = vsel %vm289_vm7, %v1102_v59, %v1103_v58  ;;  %v618_v3 = vsel %vm289_vm7, %v613_v51, %v1102_v59 }
 0x287   : > { %v1106_v4 = vpop.permute.xlu1 %1105  ;;  %v1027_v5 = vpack.c.bf16 %v637_v61, %v619_v1  ;;  %v1029_v6 = vpack.c.bf16 %v636_v62, %v618_v3 }
 0x288   : > { %v1108_v11 = vunpack.i.h.bf16 %v1106_v4  ;;  %v1107_v13 = vunpack.i.l.bf16 %v1106_v4  ;;  %v695_v12 = vsel %vm373_vm3, %v1112_v0, %v1113_v63  ;;  %v694_v17 = vsel %vm373_vm3, %v689_v52, %v1112_v0 }
 0x289   : > { %v722_v14 = vpop.permute.xlu0 %721  ;;  %1028 = vmatprep.subr.bf16.mxu1 %v1027_v5 }
 0x28a   : > { %1030 = vmatpush1.bf16.msra.mxu1 %v1029_v6  ;;  %v666_v15 = vsel %vm345_vm5, %v1107_v13, %v1108_v11  ;;  %v665_v16 = vsel %vm345_vm5, %v660_v53, %v1107_v13 }
 0x28b   : > { %v751_v19 = vpop.permute.xlu1 %750  ;;  %v1031_v21 = vpack.c.bf16 %v695_v12, %v666_v15  ;;  %v1033_v22 = vpack.c.bf16 %v694_v17, %v665_v16 }
 0x28d   : > { %v1116_v7 = vpop.permute.xlu0 %1115  ;;  %1032 = vmatprep.subr.bf16.mxu1 %v1031_v21 }
 0x28e   : > { %1034 = vmatpush1.bf16.msra.mxu1 %v1033_v22  ;;  %v1118_v24 = vunpack.i.h.bf16 %v1116_v7  ;;  %v1117_v10 = vunpack.i.l.bf16 %v1116_v7 }
 0x28f   : > { %v1121_v23 = vpop.permute.xlu1 %1120 }
 0x290   : > { %v1123_v8 = vunpack.i.h.bf16 %v1121_v23  ;;  %v1122_v9 = vunpack.i.l.bf16 %v1121_v23  ;;  %v775_v35 = vsel %vm449_vm6, %v1117_v10, %v1118_v24 }
 0x291   : > { %v769_v27 = vpop.permute.xlu0 %768 }
 0x292   : > { %v728_v25 = vsel %vm357_vm0, %v1122_v9, %v1123_v8  ;;  %v727_v26 = vsel %vm357_vm0, %v722_v14, %v1122_v9  ;;  %v774_v33 = vsel %vm449_vm6, %v769_v27, %v1117_v10 }
 0x293   : > { %v1126_v28 = vpop.permute.xlu1 %1125  ;;  %v1035_v29 = vpack.c.bf16 %v728_v25, %v1429_v20  ;;  %v1037_v30 = vpack.c.bf16 %v727_v26, %v1426_v18 }
 0x294   : > { %v1128_v31 = vunpack.i.h.bf16 %v1126_v28  ;;  %v1127_v32 = vunpack.i.l.bf16 %v1126_v28 }
 0x295   : > { %1036 = vmatprep.subr.bf16.mxu1 %v1035_v29  ;;  %v802_v38 = vpop.permute.xlu0 %801 }
 0x296   : > { %1038 = vmatpush1.bf16.msra.mxu1 %v1037_v30  ;;  %v757_v34 = vsel %vm330_vm2, %v1127_v32, %v1128_v31  ;;  %v756_v36 = vsel %vm330_vm2, %v751_v19, %v1127_v32 }
 0x297   : > { %v800_v37 = vpop.permute.xlu1 %799  ;;  %v1039_v39 = vpack.c.bf16 %v775_v35, %v757_v34  ;;  %v1041_v40 = vpack.c.bf16 %v774_v33, %v756_v36 }
 0x298   : > { %v804_v18 = vsel %vm274_vm1, %v800_v37, %v802_v38 }
 0x299   : > { %1040 = vmatprep.subr.bf16.mxu1 %v1039_v39 }
 0x29a   : > { %1042 = vmatpush1.bf16.msra.mxu1 %v1041_v40 }
 0x29b   : > { %v798_v20 = vpop.permute.xlu1 %797  ;;  %848 = vmatprep.subr.mxu1 %v804_v18 }
 0x29c   : > { %v803_v41 = vsel %vm274_vm1, %v798_v20, %v800_v37 }
 0x29e   : > { %849 = vmatpush1.msra.mxu1 %v803_v41 }
 0x29f   : > { %1010 = vmatmul.mubr.msk.f32.vlgmr.msra.gmra.mrb[0].mxu1 %vm828_vm10, %v809_v42 }
 0x2a6   : > { %v907_v43 = vpop.permute.xlu0 %906 }
 0x2ac   : > { %v916_v2 = vpop.permute.xlu1 %915 }
 0x372   : > { %v898_v44 = vpop.f32.mrb[0].mxu1 }
 0x373   : > { %v909_v45 = vmul.f32 %v907_v43, %v898_v44  ;;  %v900_v46 = vpop.f32.mrb[1].mxu1 }
 0x374   : > { %v910_v47 = vmul.f32 %v907_v43, %v900_v46 }
 0x375   : > { %v918_v48 = vadd.f32 %v916_v2, %v909_v45 }
 0x376   : > { %v919_v49 = vadd.f32 %v916_v2, %v910_v47 }
 0x377   : > { %v920_v50 = vmax.f32 %v918_v48, 0.0 }
 0x378   : > { %v921_v51 = vmax.f32 %v919_v49, 0.0 }
 0x379   : > { %922 = vst [vmem:[%s244_s11] sm:$0xff] %v920_v50 }
 0x37a   : > { %923 = vst [vmem:[%s244_s11 + $0x8] sm:$0xff] %v921_v51 }
 0x37b   : > { %1147 = shalt.err (!%p1144_p3)
}
 0x37c   : > { %s1148_s28 = scalar_lea.hbm %s1497_s15, 256  ;;  %s1152_s29 = scalar_lea.hbm %s1545_s6, 512 }
 0x37d   : > { %p1149_p4 = scmp.ne.s32.totalorder %s1497_s15, %s1148_s28  ;;  %p1153_p9 = scmp.lt.u32.totalorder %s1497_s15, %s1545_s6 }
 0x37e   : > { %p1154_p10 = scmp.lt.u32.totalorder %s1152_s29, %s1148_s28  ;;  %p1156_p12 = scmp.lt.u32.totalorder %s1148_s28, %s1497_s15 }
 0x37f   : > { %p1150_p7 = pnand %p1149_p4, %p1282_p5 }
 0x380   : > { %p1155_p11 = por %p1154_p10, %p1153_p9 }
 0x381   : > { %p1151_p8 = pneg %p1150_p7 }
 0x382   : > { %p1157_p13 = por %p1156_p12, %p1155_p11 }
 0x384   : > { %p1158_p0 = pnand %p1157_p13, %p1151_p8 }
 0x386   : > { %1161 = shalt.err (!%p1158_p0)
}
 0x387   : > { %1043 = dma.vmem_to_hbm [thread:$0]  (%p1282_p5), %s1499_s12, 256, %s1497_s15, %s925_s16  }
 0x388 PF: > { %p1049_p1 = scmp.ge.s32.totalorder %s1196_s24, 2  ;;  %s951_s11 = sand.u32 1, %s1184_s21  }
 0x389   : > { %s952_s13 = scalar_lea.sflag [#allocation7], %s951_s11 }
 0x38a   : > { %p1046_p2 = pnand %p1049_p1, %p1286_p6 }
 0x38c   : > { %1179 = dma.done.wait (!%p1046_p2), %s952_s13, 256  }
 0x38d   : > { %1181 = vsyncadd (!%p1046_p2), %s952_s13, 4294967040  ;;  %p16_p3 = scmp.ge.s32.totalorder %s1269_s27, 4   ;;  %s1548_s21 = smov %s1188_s22 }
 0x38e   : > { %s1549_s22 = smov %s1192_s23  ;;  %s1550_s23 = smov %s1280_s30 }
 0x38f   : > { %s1551_s24 = smov %s1269_s27  ;;  %18 = sbr.rel (!%p16_p3) target bundleno = 3 (0x3), region = 82 }
 0x396   :  { %957 = vsyncpa [#allocation7], 1 }
 0x397   :  { %959 = vsyncpa [#allocation7 + $0x1], 1 }

</bundles_post_ra>
